<compile_context>
chip_gen: v7x
topology: tpu7x:2x2x1
jax: 0.10.0
libtpu: 0.0.40
codegen_flags: <defaults>
</compile_context>

<pallas_src>
import jax
import jax.numpy as jnp
from jax.experimental import pallas as pl
from jax.experimental.pallas import tpu as pltpu


def _round_up(a: int, b: int) -> int:
    return (a + b - 1) // b * b


def _pick_tile(n_aligned: int, align: int, target: int,
               min_blocks: int = 1, max_pad_frac: float = 0.15) -> int:
    """Largest tile (multiple of `align`, <= target, <= n_aligned) whose padding
    of n_aligned stays under max_pad_frac and that yields >= min_blocks blocks
    when possible. Falls back to `align`."""
    t = max(align, min(_round_up(target, align), n_aligned))
    for cand in range(t, align - 1, -align):
        padded = _round_up(n_aligned, cand)
        if padded - n_aligned > max_pad_frac * n_aligned:
            continue
        if padded // cand >= min_blocks:
            return cand
    return align


def _make_gcn_kernel(x_resident: bool, tile_k: int, cin_p: int):
    """Build the kernel body; x_resident / tile_k / cin_p are trace-time consts."""

    def kernel(a_ref, xk_ref, xi_ref, w_ref, o_ref, acc_ref):
        k = pl.program_id(1)

        @pl.when(k == 0)
        def _init():
            acc_ref[...] = jnp.zeros_like(acc_ref)

        if x_resident:
            # X lives fully in VMEM; take the k-th aligned row slab.
            start = pl.multiple_of(k * tile_k, tile_k)
            xk = xk_ref[pl.ds(start, tile_k), :]
        else:
            xk = xk_ref[...]

        # Partial neighbor aggregation: (tm, tk) bf16 @ (tk, cin_p) bf16 -> f32.
        acc_ref[...] += jnp.dot(a_ref[...], xk,
                                preferred_element_type=jnp.float32)

        @pl.when(k == pl.num_programs(1) - 1)
        def _finalize():
            # Two MXU matmuls against static, tile-aligned slices of the stacked
            # weight (no concat / copy scratch needed).
            # TODO(synk): keep agg in f32 for the W_rel matmul if tighter
            # accuracy is required for very high-degree nodes.
            out = jnp.dot(acc_ref[...].astype(jnp.bfloat16), w_ref[:cin_p, :],
                          preferred_element_type=jnp.float32)
            out = out + jnp.dot(xi_ref[...], w_ref[cin_p:, :],
                                preferred_element_type=jnp.float32)
            o_ref[...] = jnp.maximum(out, 0.0).astype(o_ref.dtype)

    return kernel


def gcn_conv(x, edge_index, w_rel, w_root):
    """GraphConv(cin, cout, bias=False) followed by ReLU.

    x:          [N, cin] float32 node features
    edge_index: [2, E]   int32   (row 0 = src, row 1 = dst)
    w_rel:      [cout, cin]  weight applied to aggregated neighbor features
    w_root:     [cout, cin]  weight applied to the node's own features
    returns:    [N, cout] float32
    """
    N, cin = x.shape
    cout = w_rel.shape[0]

    cin_p = _round_up(cin, 128)
    cout_p = _round_up(cout, 128)
    N8 = _round_up(N, 8)
    N128 = _round_up(N, 128)

    # ---- Tile sizing (padding-guarded, VMEM-budgeted) -----------------------
    VMEM_TILE_BUDGET = 26 * 1024 * 1024   # fits every generation with headroom
    X_RESIDENT_BUDGET = 8 * 1024 * 1024   # cap for keeping all of X in VMEM

    # Row tile: large to amortize per-grid-step overhead, but prefer >= 2 row
    # blocks so the "parallel" axis can shard across v7x's two TensorCores.
    tile_m = _pick_tile(N8, 8, target=512, min_blocks=2)
    np_rows = _round_up(N8, tile_m)

    # Keep X resident in VMEM when small (kills per-row-tile re-streaming).
    x_resident = 2 * N128 * cin_p * 2 <= X_RESIDENT_BUDGET

    # Fixed VMEM users (double-buffered where pipelined).
    w_bytes = 2 * (2 * cin_p) * cout_p * 2
    xi_bytes = 2 * tile_m * cin_p * 2
    out_bytes = 2 * tile_m * cout_p * 2          # bf16 output block
    acc_bytes = tile_m * cin_p * 4
    xk_fixed = 2 * N128 * cin_p * 2 if x_resident else 0
    fixed = w_bytes + xi_bytes + out_bytes + acc_bytes + xk_fixed

    # Bytes per unit of tile_k: double-buffered A (+ streamed X block if any).
    per_k = 2 * tile_m * 2 + (0 if x_resident else 2 * cin_p * 2)
    tk_cap = max(128, (VMEM_TILE_BUDGET - fixed) // per_k)
    tile_k = _pick_tile(N128, 128, target=min(4096, tk_cap), min_blocks=1)
    np_cols = _round_up(N128, tile_k)
    np_max = max(np_rows, np_cols)

    a_bytes = 2 * tile_m * tile_k * 2
    xk_bytes = (2 * np_cols * cin_p * 2) if x_resident else (2 * tile_k * cin_p * 2)
    total_vmem = a_bytes + xk_bytes + xi_bytes + out_bytes + acc_bytes + w_bytes
    vmem_limit = min(max(int(total_vmem * 1.3) + (2 << 20), 32 << 20), 48 << 20)

    # ---- JAX glue: dense bf16 adjacency, A[i, j] = #edges j -> i ------------
    # TODO(synk): for large sparse graphs (E << N^2) replace the dense A@X
    # aggregation with a scalar-prefetch edge-gather kernel instead of O(N^2).
    src, dst = edge_index[0], edge_index[1]
    adj = jnp.zeros((np_rows, np_cols), jnp.bfloat16)
    adj = adj.at[dst, src].add(1.0)   # small integer counts: exact in bf16

    # Padded bf16 node features (zero padding keeps the math exact).
    x_p = jnp.zeros((np_max, cin_p), jnp.bfloat16)
    x_p = x_p.at[:N, :cin].set(x.astype(jnp.bfloat16))

    # Stacked, pre-transposed weight [W_rel^T ; W_root^T] -> [2*cin_p, cout_p].
    w_stack = jnp.zeros((2 * cin_p, cout_p), jnp.bfloat16)
    w_stack = w_stack.at[:cin, :cout].set(w_rel.T.astype(jnp.bfloat16))
    w_stack = w_stack.at[cin_p:cin_p + cin, :cout].set(
        w_root.T.astype(jnp.bfloat16))

    grid = (np_rows // tile_m, np_cols // tile_k)

    if x_resident:
        xk_spec = pl.BlockSpec((np_cols, cin_p), lambda i, k: (0, 0))
        x_traffic = np_cols * cin_p * 2
    else:
        xk_spec = pl.BlockSpec((tile_k, cin_p), lambda i, k: (k, 0))
        x_traffic = grid[0] * np_cols * cin_p * 2
    x_traffic += np_rows * cin_p * 2   # self features re-fetched per row tile

    flops = 2 * np_rows * np_cols * cin_p + 2 * np_rows * (2 * cin_p) * cout_p
    bytes_accessed = (np_rows * np_cols * 2        # A (bf16)
                      + x_traffic                  # X
                      + 2 * cin_p * cout_p * 2     # stacked weight
                      + np_rows * cout_p * 2)      # bf16 output

    out = pl.pallas_call(
        _make_gcn_kernel(x_resident, tile_k, cin_p),
        out_shape=jax.ShapeDtypeStruct((np_rows, cout_p), jnp.bfloat16),
        grid_spec=pltpu.PrefetchScalarGridSpec(
            num_scalar_prefetch=0,
            grid=grid,
            in_specs=[
                # A tile: rows follow i, columns follow the reduction axis k.
                pl.BlockSpec((tile_m, tile_k), lambda i, k: (i, k)),
                # Neighbor features: resident (constant block) or streamed.
                xk_spec,
                # Self/root features matching the output rows.
                pl.BlockSpec((tile_m, cin_p), lambda i, k: (i, 0)),
                # Stacked weight: resident (same block every iteration).
                pl.BlockSpec((2 * cin_p, cout_p), lambda i, k: (0, 0)),
            ],
            out_specs=pl.BlockSpec((tile_m, cout_p), lambda i, k: (i, 0)),
            scratch_shapes=[
                pltpu.VMEM((tile_m, cin_p), jnp.float32),   # agg accumulator
            ],
        ),
        compiler_params=pltpu.CompilerParams(
            dimension_semantics=("parallel", "arbitrary"),
            vmem_limit_bytes=vmem_limit,
        ),
        cost_estimate=pl.CostEstimate(
            flops=flops, transcendentals=0, bytes_accessed=bytes_accessed),
    )(adj, x_p, x_p, w_stack)

    return out[:N, :cout].astype(jnp.float32)


def _reference(x, edge_index, w_rel, w_root):
    """Pure-JAX f32 reference for correctness checking."""
    src, dst = edge_index[0], edge_index[1]
    agg = jnp.zeros((x.shape[0], x.shape[1]), x.dtype).at[dst].add(x[src])
    out = agg @ w_rel.T + x @ w_root.T
    return jnp.maximum(out, 0.0)


if __name__ == "__main__":
    key = jax.random.PRNGKey(0)
    k_x, k_e_src, k_e_dst, k_w1, k_w2 = jax.random.split(key, 5)

    N, E = 16, 48          # nodes, edges
    cin, cout = 32, 64     # feature dims

    x = jax.random.normal(k_x, (N, cin), dtype=jnp.float32)
    edge_index = jnp.stack(
        [
            jax.random.randint(k_e_src, (E,), 0, N, dtype=jnp.int32),
            jax.random.randint(k_e_dst, (E,), 0, N, dtype=jnp.int32),
        ],
        axis=0,
    )

    # Deterministic parameter init (Glorot-like scale), mimicking
    # gnn.GraphConv(cin, cout, bias=False): lin_rel.weight, lin_root.weight.
    scale = (6.0 / (cin + cout)) ** 0.5
    w_rel = jax.random.uniform(k_w1, (cout, cin), jnp.float32, -scale, scale)
    w_root = jax.random.uniform(k_w2, (cout, cin), jnp.float32, -scale, scale)

    y = gcn_conv(x, edge_index, w_rel, w_root)
    y = jax.block_until_ready(y)

    y_ref = _reference(x, edge_index, w_rel, w_root)
    assert y.shape == (N, cout)
    # bf16 MXU operands / bf16 output with f32 accumulation -> bf16 tolerance.
    assert jnp.allclose(y, y_ref, atol=5e-2, rtol=5e-2), "mismatch vs reference"

    print("KERNEL_OK")
</pallas_src>

<mosaic_0001>
module attributes {stable_mosaic.version = 11 : i64} {
  func.func @kernel(%arg0: i32, %arg1: i32, %arg2: memref<8x128xbf16, #tpu.memory_space<vmem>>, %arg3: memref<128x128xbf16, #tpu.memory_space<vmem>>, %arg4: memref<8x128xbf16, #tpu.memory_space<vmem>>, %arg5: memref<256x128xbf16, #tpu.memory_space<vmem>>, %arg6: memref<8x128xbf16, #tpu.memory_space<vmem>>, %arg7: memref<8x128xf32, #tpu.memory_space<vmem>>) attributes {dimension_semantics = [#tpu.dimension_semantics<parallel>, #tpu.dimension_semantics<arbitrary>], iteration_bounds = array<i64: 2, 1>, scalar_prefetch = 0 : i64, scratch_operands = 1 : i64, tpu.core_type = #tpu.core_type<tc>, window_params = [{transform_indices = @transform_0, window_bounds = array<i64: 8, 128>}, {pipeline_mode = #tpu.pipeline_mode<synchronous>, transform_indices = @transform_1, window_bounds = array<i64: 128, 128>}, {transform_indices = @transform_2, window_bounds = array<i64: 8, 128>}, {pipeline_mode = #tpu.pipeline_mode<synchronous>, transform_indices = @transform_3, window_bounds = array<i64: 256, 128>}, {transform_indices = @transform_4, window_bounds = array<i64: 8, 128>}]} {
    %c0_i32 = arith.constant 0 : i32
    %0 = arith.cmpi eq, %arg1, %c0_i32 : i32
    %1 = arith.extui %0 : i1 to i32
    %c0_i32_0 = arith.constant 0 : i32
    %2 = arith.cmpi ne, %1, %c0_i32_0 : i32
    scf.if %2 {
      %cst_9 = arith.constant 0.000000e+00 : f32
      %15 = vector.broadcast %cst_9 : f32 to vector<8x128xf32>
      %c0_10 = arith.constant 0 : index
      %c0_11 = arith.constant 0 : index
      %16 = vector.load %arg7[%c0_10, %c0_11] : memref<8x128xf32, #tpu.memory_space<vmem>>, vector<8x128xf32>
      tpu.vector_store %arg7[%c0_10, %c0_11], %15 {strides = array<i32>} : memref<8x128xf32, #tpu.memory_space<vmem>>, vector<8x128xf32>,
    } else {
    }
    %c128_i32 = arith.constant 128 : i32
    %3 = arith.muli %arg1, %c128_i32 : i32
    %4 = tpu.assume_multiple %3, 128 : i32
    %5 = arith.index_cast %4 : i32 to index
    %c0 = arith.constant 0 : index
    %6 = vector.load %arg3[%5, %c0] : memref<128x128xbf16, #tpu.memory_space<vmem>>, vector<128x128xbf16>
    %c0_1 = arith.constant 0 : index
    %c0_2 = arith.constant 0 : index
    %7 = vector.load %arg7[%c0_1, %c0_2] : memref<8x128xf32, #tpu.memory_space<vmem>>, vector<8x128xf32>
    %c0_3 = arith.constant 0 : index
    %c0_4 = arith.constant 0 : index
    %8 = vector.load %arg2[%c0_3, %c0_4] : memref<8x128xbf16, #tpu.memory_space<vmem>>, vector<8x128xbf16>
    %cst = arith.constant dense<0.000000e+00> : vector<8x128xf32>
    %9 = tpu.matmul %8, %6, %cst {dimension_numbers = #tpu.dot_dimension_numbers<[1], [0], [0], [1], [0, 0, 1, 1], [], []>} : vector<8x128xbf16>, vector<128x128xbf16>, vector<8x128xf32> -> vector<8x128xf32>
    %10 = arith.addf %7, %9 : vector<8x128xf32>
    %c0_5 = arith.constant 0 : index
    %c0_6 = arith.constant 0 : index
    %11 = vector.load %arg7[%c0_5, %c0_6] : memref<8x128xf32, #tpu.memory_space<vmem>>, vector<8x128xf32>
    tpu.vector_store %arg7[%c0_5, %c0_6], %10 {strides = array<i32>} : memref<8x128xf32, #tpu.memory_space<vmem>>, vector<8x128xf32>,
    %c0_i32_7 = arith.constant 0 : i32
    %12 = arith.cmpi eq, %arg1, %c0_i32_7 : i32
    %13 = arith.extui %12 : i1 to i32
    %c0_i32_8 = arith.constant 0 : i32
    %14 = arith.cmpi ne, %13, %c0_i32_8 : i32
    scf.if %14 {
      %c0_9 = arith.constant 0 : index
      %c0_10 = arith.constant 0 : index
      %15 = vector.load %arg7[%c0_9, %c0_10] : memref<8x128xf32, #tpu.memory_space<vmem>>, vector<8x128xf32>
      %16 = arith.truncf %15 : vector<8x128xf32> to vector<8x128xbf16>
      %c0_11 = arith.constant 0 : index
      %c0_12 = arith.constant 0 : index
      %17 = vector.load %arg5[%c0_11, %c0_12] : memref<256x128xbf16, #tpu.memory_space<vmem>>, vector<128x128xbf16>
      %cst_13 = arith.constant dense<0.000000e+00> : vector<8x128xf32>
      %18 = tpu.matmul %16, %17, %cst_13 {dimension_numbers = #tpu.dot_dimension_numbers<[1], [0], [0], [1], [0, 0, 1, 1], [], []>} : vector<8x128xbf16>, vector<128x128xbf16>, vector<8x128xf32> -> vector<8x128xf32>
      %c0_14 = arith.constant 0 : index
      %c0_15 = arith.constant 0 : index
      %19 = vector.load %arg4[%c0_14, %c0_15] : memref<8x128xbf16, #tpu.memory_space<vmem>>, vector<8x128xbf16>
      %c128 = arith.constant 128 : index
      %c0_16 = arith.constant 0 : index
      %20 = vector.load %arg5[%c128, %c0_16] : memref<256x128xbf16, #tpu.memory_space<vmem>>, vector<128x128xbf16>
      %cst_17 = arith.constant dense<0.000000e+00> : vector<8x128xf32>
      %21 = tpu.matmul %19, %20, %cst_17 {dimension_numbers = #tpu.dot_dimension_numbers<[1], [0], [0], [1], [0, 0, 1, 1], [], []>} : vector<8x128xbf16>, vector<128x128xbf16>, vector<8x128xf32> -> vector<8x128xf32>
      %22 = arith.addf %18, %21 : vector<8x128xf32>
      %cst_18 = arith.constant 0.000000e+00 : f32
      %23 = vector.broadcast %cst_18 : f32 to vector<8x128xf32>
      %24 = arith.maximumf %22, %23 : vector<8x128xf32>
      %25 = arith.truncf %24 : vector<8x128xf32> to vector<8x128xbf16>
      %c0_19 = arith.constant 0 : index
      %c0_20 = arith.constant 0 : index
      %26 = vector.load %arg6[%c0_19, %c0_20] : memref<8x128xbf16, #tpu.memory_space<vmem>>, vector<8x128xbf16>
      tpu.vector_store %arg6[%c0_19, %c0_20], %25 {strides = array<i32>} : memref<8x128xbf16, #tpu.memory_space<vmem>>, vector<8x128xbf16>,
    } else {
    }
    return
  }
  func.func @transform_0(%arg0: i32, %arg1: i32) -> (i32, i32) {
    %c0_i32 = arith.constant 0 : i32
    return %arg0, %arg1 : i32, i32
  }
  func.func @transform_1(%arg0: i32, %arg1: i32) -> (i32, i32) {
    %c0_i32 = arith.constant 0 : i32
    %c0_i32_0 = arith.constant 0 : i32
    %c0_i32_1 = arith.constant 0 : i32
    return %c0_i32, %c0_i32_0 : i32, i32
  }
  func.func @transform_2(%arg0: i32, %arg1: i32) -> (i32, i32) {
    %c0_i32 = arith.constant 0 : i32
    %c0_i32_0 = arith.constant 0 : i32
    return %arg0, %c0_i32 : i32, i32
  }
  func.func @transform_3(%arg0: i32, %arg1: i32) -> (i32, i32) {
    %c0_i32 = arith.constant 0 : i32
    %c0_i32_0 = arith.constant 0 : i32
    %c0_i32_1 = arith.constant 0 : i32
    return %c0_i32, %c0_i32_0 : i32, i32
  }
  func.func @transform_4(%arg0: i32, %arg1: i32) -> (i32, i32) {
    %c0_i32 = arith.constant 0 : i32
    %c0_i32_0 = arith.constant 0 : i32
    return %arg0, %c0_i32 : i32, i32
  }
}

</mosaic_0001>

<bundles_post_ra>
// kernel: tpu_custom_call.1
= control target key start
LH: loop header
LB: loop body
LE: loop exit
PB: predicated region body
PF: predicated region fallthrough
CT: control target
= control target key end

     0   :  { %s1586_s0 = inlined_call_operand.hbm [shape: bf16[16,128], index: 0, kind: input, shape index: {}]   ;;  %s1587_s1 = inlined_call_operand.hbm [shape: bf16[128,128], index: 1, kind: input, shape index: {}]   ;;  %s1588_s2 = inlined_call_operand.hbm [shape: bf16[128,128], index: 2, kind: input, shape index: {}]   ;;  %s1589_s3 = inlined_call_operand.hbm [shape: bf16[256,128], index: 3, kind: input, shape index: {}]   ;;  %s1590_s4 = inlined_call_operand.hbm [shape: bf16[16,128], index: 4, kind: output, shape index: {}]  }
   0x1   :  { %1603 = sst [smem:[#allocation19_spill]] %s1587_s1 }
   0x2   :  { %9 = vsyncpa [#allocation4], 0 }
   0x3   :  { %11 = vsyncpa [#allocation4 + $0x1], 0 }
   0x4   :  { %12 = vsyncpa [#allocation7], 0 }
   0x5   :  { %13 = vsyncpa [#allocation5], 0 }
   0x6   :  { %15 = vsyncpa [#allocation5 + $0x1], 0  ;;  %s1258_s15 = smov 0   ;;  %s1260_s16 = smov 0  }
   0x7   :  { %s1262_s17 = smov 0   ;;  %s1264_s18 = smov 0  }
   0x8   :  { %s1266_s19 = smov 0   ;;  %s1268_s20 = smov 0  }
   0x9 LB: > { %1604 = sst [smem:[#allocation16_spill]] %s1218_s19  ;;  %s1289_s21 = sadd.s32 4294967295, %s1222_s20   ;;  %s1222_s20 = sphi %s1268_s20, %s21_s20   ;;  %s1218_s19 = sphi %s1266_s19, %s1634_s19   ;;  %s1214_s18 = sphi %s1264_s18, %s1633_s18   ;;  %s1210_s17 = sphi %s1262_s17, %s1637_s17   ;;  %s1206_s16 = sphi %s1260_s16, %s1636_s16   ;;  %s1202_s15 = sphi %s1258_s15, %s1635_s15  }
   0xa   : > { %s762_s22 = sadd.s32 4294967294, %s1222_s20   ;;  %p55_p0 = scmp.ne.s32.totalorder %s1206_s16, %s1202_s15 }
   0xb   : > { %p1591_p1 = scmp.eq.s32.totalorder %s1289_s21, 0  ;;  %p153_p3 = scmp.eq.s32.totalorder %s762_s22, 1 }
   0xc   : > { %p763_p5 = scmp.ge.s32.totalorder %s1222_s20, 1  ;;  %p160_p7 = scmp.lt.s32.totalorder %s1222_s20, 3 }
   0xd   : > { %p1298_p4 = por %p1591_p1, %p55_p0  ;;  %p1303_p6 = por %p153_p3, %p55_p0 }
   0xe   : > { %p1308_p8 = pnand %p763_p5, %p160_p7  ;;  %s1224_s26 = smov [#allocation6]  }
   0xf   : > { %s1605_s23 = scalar_select %p1298_p4, 1, 0 }
  0x10   : > { %s1606_s24 = scalar_select %p1303_p6, 1, 0 }
  0x11   : > { %s1607_s25 = scalar_select %p1308_p8, 1, 0 }
  0x12   : > { %s172_s27 = sshll.u32 %s1224_s26, 4  ;;  %p910_p9 = pneg %p1308_p8  ;;  %s173_s27 = int_to_ptr.vmem [resolvable:$true] %s172_s27 }
  0x13   : > { %s33_s29 = sadd.s32 1, %s1218_s19  ;;  %s1609_s1 = sld [smem:[#allocation19_spill]] }
  0x14   : > { %p1317_p11 = pnand %p910_p9, %p1591_p1 }
  0x16   : > { %p1598_p13 = pneg %p1317_p11 }
  0x19   : > { %s1012_s6 = scalar_lea.hbm %s1609_s1, 1024 }
  0x1a   : > { %p1013_p12 = scmp.ne.s32.totalorder %s1609_s1, %s1012_s6  ;;  %p1019_p5 = scmp.lt.u32.totalorder %s1012_s6, %s1609_s1 }
  0x1c   : > { %p1015_p0 = pnand %p1598_p13, %p1013_p12 }
  0x1e   : > { %p1016_p3 = pneg %p1015_p0 }
  0x20   : > { %p1021_p7 = pnand %p1019_p5, %p1016_p3 }
  0x22   : > { %1024 = shalt.err (!%p1021_p7)
}
  0x23   : > { %s1025_s11 = scalar_lea.vmem %s173_s27, 1024  ;;  %p1033_p2 = scmp.lt.s32.totalorder %s173_s27, %s173_s27 }
  0x24   : > { %p1026_p9 = scmp.ne.s32.totalorder %s173_s27, %s1025_s11  ;;  %p1034_p6 = scmp.lt.s32.totalorder %s1025_s11, %s1025_s11 }
  0x26   : > { %p1028_p10 = pnand %p1026_p9, %p1598_p13  ;;  %p1035_p4 = por %p1034_p6, %p1033_p2 }
  0x28   : > { %p1029_p1 = pneg %p1028_p10 }
  0x2a   : > { %p1036_p8 = pnand %p1035_p4, %p1029_p1 }
  0x2c   : > { %1039 = shalt.err (!%p1036_p8)
}
  0x2d   : > { %s1594_s12 = smov 64   ;;  %s1595_s13 = smov 4  }
  0x2e   : > { %913 = dma.hbm_to_vmem [thread:$0]  (!%p1317_p11), %s1609_s1, 1024, %s173_s27, [#allocation7], %s1594_s12, %s1594_s12, %s1595_s13  }
  0x2f   : > { %p35_p1 = scmp.ge.s32.totalorder %s33_s29, 2  ;;  %s42_s26 = sadd.s32 1, %s1210_s17 }
  0x30   : > { %p49_p2 = scmp.ne.s32.totalorder %s1210_s17, %s1206_s16  ;;  %p50_p4 = scmp.eq.s32.totalorder %s1222_s20, 0 }
  0x31   : > { %s1639_s29 = smov (%p35_p1, %s33_s29), 0  ;;  %p1612_p8 = scmp.eq.s32.totalorder %s1289_s21, 1 }
  0x32   : > { %1610 = sst [smem:[#allocation17_spill]] %s1639_s29  ;;  %p1353_p6 = por %p50_p4, %p49_p2 }
  0x33   : > { %p1359_p10 = por %p1612_p8, %p49_p2  ;;  %s37_s6 = ssub.s32 %s1218_s19, %s1639_s29 }
  0x34   : > { %p930_p12 = scmp.lt.s32.totalorder %s1222_s20, 2  ;;  %p40_p0 = scmp.eq.s32.totalorder %s37_s6, 0 }
  0x35   : > { %s1613_s5 = scalar_select %p1359_p10, 1, 0 }
  0x36   : > { %s199_s27 = sand.u32 1, %s1222_s20   ;;  %s201_s7 = sand.u32 1, %s1210_s17  }
  0x37   : > { %s1369_s8 = scalar_select %p40_p0, %s1210_s17, %s42_s26  }
  0x38   : > { %s1371_s9 = sshll.u32 %s201_s7, 2  ;;  %s768_s10 = sshll.u32 %s1218_s19, 6 }
  0x39   : > { %1614 = sst [smem:[#allocation18_spill]] %s1369_s8  ;;  %s1377_s22 = scalar_lea.hbm %s1586_s0, %s768_s10 }
  0x3a   : > { %s203_s12 = scalar_lea.vmem [#allocation3], %s1371_s9  ;;  %p1382_p3 = pnand %p930_p12, %p1353_p6 }
  0x3b   : > { %s211_s13 = sshll.u32 %s203_s12, 4  ;;  %s1391_s11 = scalar_lea.hbm %s1588_s2, %s768_s10  ;;  %s1386_s13 = int_to_ptr.vmem [resolvable:$true] %s211_s13 }
  0x3c   : > { %s1615_s6 = scalar_select %p1382_p3, 1, 0 }
  0x3d   : > { %s1393_s14 = scalar_lea.sflag [#allocation4], %s199_s27  ;;  %s1040_s1 = scalar_lea.hbm %s1377_s22, 64 }
  0x3e   : > { %p1041_p5 = scmp.ne.s32.totalorder %s1377_s22, %s1040_s1  ;;  %p1600_p7 = pneg %p1382_p3 }
  0x3f   : > { %s1045_s29 = scalar_lea.hbm %s1586_s0, 128  ;;  %p1046_p2 = scmp.lt.u32.totalorder %s1377_s22, %s1586_s0 }
  0x40   : > { %p1043_p9 = pnand %p1600_p7, %p1041_p5  ;;  %p1047_p4 = scmp.lt.u32.totalorder %s1045_s29, %s1040_s1 }
  0x41   : > { %p1049_p8 = scmp.lt.u32.totalorder %s1040_s1, %s1377_s22 }
  0x42   : > { %p1044_p1 = pneg %p1043_p9  ;;  %p1048_p6 = por %p1047_p4, %p1046_p2 }
  0x44   : > { %p1050_p12 = por %p1049_p8, %p1048_p6 }
  0x46   : > { %p1051_p0 = pnand %p1050_p12, %p1044_p1 }
  0x48   : > { %1054 = shalt.err (!%p1051_p0)
}
  0x49   : > { %s1055_s27 = scalar_lea.vmem %s1386_s13, 64  ;;  %s1227_s10 = smov [#allocation3]  }
  0x4a   : > { %p1056_p5 = scmp.ne.s32.totalorder %s1386_s13, %s1055_s27  ;;  %s1060_s26 = sshll.u32 %s1227_s10, 4  ;;  %s1061_s26 = int_to_ptr.vmem [resolvable:$false] %s1060_s26 }
  0x4b   : > { %s1062_s19 = scalar_lea.vmem %s1061_s26, 128  ;;  %p1063_p10 = scmp.lt.s32.totalorder %s1386_s13, %s1061_s26 }
  0x4c   : > { %p1058_p9 = pnand %p1056_p5, %p1600_p7  ;;  %p1064_p2 = scmp.lt.s32.totalorder %s1062_s19, %s1055_s27 }
  0x4e   : > { %p1059_p13 = pneg %p1058_p9  ;;  %p1065_p4 = por %p1064_p2, %p1063_p10 }
  0x50   : > { %p1066_p6 = pnand %p1065_p4, %p1059_p13 }
  0x52   : > { %1069 = shalt.err (!%p1066_p6)
}
  0x53   : > { %920 = dma.hbm_to_vmem [thread:$0]  (!%p1382_p3), %s1377_s22, 64, %s1386_s13, %s1393_s14  }
  0x54   : > { %s222_s1 = scalar_lea.vmem [#allocation8], %s1371_s9  ;;  %s1228_s8 = smov [#allocation9]  }
  0x55   : > { %s229_s29 = sshll.u32 %s222_s1, 4  ;;  %s185_s7 = sshll.u32 %s1228_s8, 4  ;;  %s1422_s29 = int_to_ptr.vmem [resolvable:$true] %s229_s29  ;;  %s186_s7 = int_to_ptr.vmem [resolvable:$true] %s185_s7 }
  0x56   : > { %s1070_s27 = scalar_lea.hbm %s1589_s3, 2048  ;;  %p1616_p10 = pneg %p1317_p11 }
  0x57   : > { %p1071_p13 = scmp.ne.s32.totalorder %s1589_s3, %s1070_s27  ;;  %p1077_p12 = scmp.lt.u32.totalorder %s1070_s27, %s1589_s3 }
  0x59   : > { %p1073_p1 = pnand %p1071_p13, %p1616_p10 }
  0x5b   : > { %p1074_p8 = pneg %p1073_p1 }
  0x5d   : > { %p1079_p0 = pnand %p1077_p12, %p1074_p8 }
  0x5f   : > { %1082 = shalt.err (!%p1079_p0)
}
  0x60   : > { %s1083_s22 = scalar_lea.vmem %s186_s7, 2048  ;;  %p1617_p9 = pmov %p1616_p10 }
  0x61   : > { %p1084_p5 = scmp.ne.s32.totalorder %s186_s7, %s1083_s22  ;;  %p1091_p6 = scmp.lt.s32.totalorder %s186_s7, %s186_s7 }
  0x62   : > { %p1092_p7 = scmp.lt.s32.totalorder %s1083_s22, %s1083_s22 }
  0x63   : > { %p1086_p2 = pnand %p1084_p5, %p1617_p9 }
  0x64   : > { %p1093_p3 = por %p1092_p7, %p1091_p6 }
  0x65   : > { %p1087_p4 = pneg %p1086_p2 }
  0x67   : > { %p1094_p10 = pnand %p1093_p3, %p1087_p4 }
  0x69   : > { %1097 = shalt.err (!%p1094_p10)
}
  0x6a   : > { %s1618_s19 = smov 4   ;;  %s1619_s1 = smov 64  }
  0x6b   : > { %916 = dma.hbm_to_vmem [thread:$0]  (!%p1317_p11), %s1589_s3, 2048, %s186_s7, [#allocation7], %s1619_s1, %s1619_s1, %s1618_s19  }
  0x6c   : > { %s1098_s30 = scalar_lea.hbm %s1391_s11, 64  ;;  %p1620_p1 = scmp.ne.s32.totalorder %s1615_s6, 0 }
  0x6d   : > { %p1099_p13 = scmp.ne.s32.totalorder %s1391_s11, %s1098_s30  ;;  %s1103_s10 = scalar_lea.hbm %s1588_s2, 1024 }
  0x6e   : > { %p1621_p7 = pneg %p1620_p1  ;;  %p1104_p12 = scmp.lt.u32.totalorder %s1391_s11, %s1588_s2 }
  0x6f   : > { %p1105_p0 = scmp.lt.u32.totalorder %s1103_s10, %s1098_s30  ;;  %p1107_p9 = scmp.lt.u32.totalorder %s1098_s30, %s1391_s11 }
  0x70   : > { %p1101_p3 = pnand %p1099_p13, %p1621_p7 }
  0x71   : > { %p1106_p5 = por %p1105_p0, %p1104_p12 }
  0x72   : > { %p1102_p8 = pneg %p1101_p3 }
  0x73   : > { %p1108_p2 = por %p1107_p9, %p1106_p5 }
  0x75   : > { %p1109_p4 = pnand %p1108_p2, %p1102_p8 }
  0x77   : > { %1112 = shalt.err (!%p1109_p4)
}
  0x78   : > { %s1113_s7 = scalar_lea.vmem %s1422_s29, 64  ;;  %p1622_p6 = pmov %p1621_p7 }
  0x79   : > { %p1114_p11 = scmp.ne.s32.totalorder %s1422_s29, %s1113_s7  ;;  %s1229_s9 = smov [#allocation8]  }
  0x7a   : > { %s1118_s22 = sshll.u32 %s1229_s9, 4  ;;  %s1119_s22 = int_to_ptr.vmem [resolvable:$false] %s1118_s22 }
  0x7b   : > { %p1116_p10 = pnand %p1114_p11, %p1622_p6  ;;  %s1120_s19 = scalar_lea.vmem %s1119_s22, 128 }
  0x7c   : > { %p1121_p7 = scmp.lt.s32.totalorder %s1422_s29, %s1119_s22  ;;  %p1122_p3 = scmp.lt.s32.totalorder %s1120_s19, %s1113_s7 }
  0x7d   : > { %p1117_p13 = pneg %p1116_p10 }
  0x7e   : > { %p1123_p12 = por %p1122_p3, %p1121_p7 }
  0x80   : > { %p1124_p0 = pnand %p1123_p12, %p1117_p13 }
  0x82   : > { %1127 = shalt.err (!%p1124_p0)
}
  0x83   : > { %923 = dma.hbm_to_vmem [thread:$0]  (!%p1620_p1), %s1391_s11, 64, %s1422_s29, %s1393_s14  }
  0x84   : > { %p1623_p8 = scmp.ne.s32.totalorder %s1607_s25, 0 }
  0x85   : > { %s240_s1 = sand.u32 (!%p1623_p8), 1, %s1289_s21   ;;  %s242_s8 = sand.u32 (!%p1623_p8), 1, %s1206_s16  }
  0x86   : > { %238 = sbr.rel (%p1623_p8) target bundleno = 629 (0x275), region = 36  ;;  %s1477_s12 = sshll.u32 (!%p1623_p8), %s242_s8, 2 }
  0x87   : > { %s241_s30 = scalar_lea.sflag (!%p1623_p8), [#allocation4], %s240_s1  ;;  %s244_s27 = scalar_lea.vmem (!%p1623_p8), [#allocation3], %s1477_s12 }
  0x88   : > { %p1624_p5 = scmp.ne.s32.totalorder (!%p1623_p8), %s1605_s23, 0 }
  0x8d   : > { %1181 = dma.done.wait (%p1624_p5), %s241_s30, 64  }
  0x8e   : > { %1183 = vsyncadd (%p1624_p5), %s241_s30, 4294967232  ;;  %p1625_p1 = scmp.eq.s32.totalorder %s1289_s21, 0 }
  0x90   : > { %1185 = dma.done.wait (%p1625_p1), [#allocation7], 1024   ;;  %p1626_p9 = pmov %p1625_p1 }
  0x91   : > { %s257_s25 = scalar_lea.vmem [#allocation8], %s1477_s12 }
  0x92   : > { %1187 = vsyncadd (%p1626_p9), [#allocation7], 4294966272 }
  0x93   : > { %1189 = dma.done.wait (%p1624_p5), %s241_s30, 64  }
  0x94   : > { %1191 = vsyncadd (%p1624_p5), %s241_s30, 4294967232  ;;  %p1627_p2 = pmov %p1625_p1 }
  0x95   : > { %p1628_p4 = pmov %p1625_p1 }
  0x96   : > { %1193 = dma.done.wait (%p1627_p2), [#allocation7], 2048  }
  0x97   : > { %1195 = vsyncadd (%p1628_p4), [#allocation7], 4294965248  ;;  %v1230_v0 = vmov 0.0   ;;  %vm1231_vm0 = vmmov 0   ;;  %v988_v1 = vld [vmem:[#allocation6] sm:$0xff]   ;;  %v989_v2 = vld [vmem:[#allocation6 + $0x8] sm:$0xff]  }
  0x98   : > { %832 = vmatprep.subr.bf16.mxu0 %v1230_v0  ;;  %848 = vmatprep.mubr.msk.bf16.mxu0 %vm1231_vm0, %v1230_v0  ;;  %v990_v3 = vld [vmem:[#allocation6 + $0x10] sm:$0xff]   ;;  %v996_v4 = vld [vmem:[#allocation9 + $0x40] sm:$0xff]   ;;  %v991_v5 = vld [vmem:[#allocation6 + $0x18] sm:$0xff]   ;;  %s802_s21 = sshll.u32 %s1214_s18, 6  ;;  %s290_s23 = scalar_lea.vmem [#allocation10], %s1477_s12 }
  0x99   : > { %852 = vmatprep.subr.bf16.mxu1 %v1230_v0  ;;  %868 = vmatprep.mubr.msk.bf16.mxu1 %vm1231_vm0, %v1230_v0  ;;  %v997_v6 = vld [vmem:[#allocation9 + $0x48] sm:$0xff]   ;;  %v992_v7 = vld [vmem:[#allocation6 + $0x20] sm:$0xff]   ;;  %v998_v8 = vld [vmem:[#allocation9 + $0x50] sm:$0xff]   ;;  %s641_s6 = sshll.u32 %s290_s23, 4  ;;  %s1536_s29 = scalar_lea.hbm %s1590_s4, %s802_s21  ;;  %s1538_s6 = int_to_ptr.vmem [resolvable:$true] %s641_s6 }
  0x9a   : > { %833 = vmatpush3.bf16.msra.mxu0 %v988_v1  ;;  %853 = vmatpush3.bf16.msra.mxu1 %v996_v4  ;;  %v993_v9 = vld [vmem:[#allocation6 + $0x28] sm:$0xff]   ;;  %v999_v10 = vld [vmem:[#allocation9 + $0x58] sm:$0xff]   ;;  %v994_v11 = vld [vmem:[#allocation6 + $0x30] sm:$0xff]   ;;  %s628_s18 = scalar_lea.sflag [#allocation5], %s242_s8  ;;  %s1128_s28 = scalar_lea.vmem %s1538_s6, 64 }
  0x9b   : > { %834 = vmatprep.subr.bf16.mxu0 %v1230_v0  ;;  %854 = vmatprep.subr.bf16.mxu1 %v1230_v0  ;;  %v1000_v12 = vld [vmem:[#allocation9 + $0x60] sm:$0xff]   ;;  %v995_v13 = vld [vmem:[#allocation6 + $0x38] sm:$0xff]   ;;  %v1001_v14 = vld [vmem:[#allocation9 + $0x68] sm:$0xff]   ;;  %p1129_p11 = scmp.ne.s32.totalorder %s1538_s6, %s1128_s28  ;;  %p1629_p6 = scmp.ne.s32.totalorder %s1613_s5, 0 }
  0x9c   : > { %v319_v15 = vld [vmem:[%s244_s27] sm:$0xf]  ;;  %v1003_v17 = vld [vmem:[#allocation9 + $0x78] sm:$0xff]   ;;  %v1004_v19 = vld [vmem:[#allocation9] sm:$0xff]   ;;  %s1232_s10 = smov [#allocation10]  }
  0x9d   : > { %v1002_v16 = vld [vmem:[#allocation9 + $0x70] sm:$0xff]   ;;  %v431_v18 = vld [vmem:[%s257_s25] sm:$0xf]  ;;  %v1005_v20 = vld [vmem:[#allocation9 + $0x8] sm:$0xff]   ;;  %p1130_p10 = pnand %p1129_p11, %p1629_p6  ;;  %s1132_s26 = sshll.u32 %s1232_s10, 4  ;;  %s1133_s26 = int_to_ptr.vmem [resolvable:$false] %s1132_s26 }
  0x9e   : > { %835 = vmatpush3.bf16.msra.mxu0 %v989_v2  ;;  %855 = vmatpush3.bf16.msra.mxu1 %v997_v6  ;;  %v1006_v21 = vld [vmem:[#allocation9 + $0x10] sm:$0xff]   ;;  %v1007_v22 = vld [vmem:[#allocation9 + $0x18] sm:$0xff]   ;;  %v1008_v23 = vld [vmem:[#allocation9 + $0x20] sm:$0xff]   ;;  %s1134_s13 = scalar_lea.vmem %s1133_s26, 128  ;;  %p1135_p7 = scmp.lt.s32.totalorder %s1538_s6, %s1133_s26 }
  0x9f   : > { %836 = vmatprep.subr.bf16.mxu0 %v1230_v0  ;;  %856 = vmatprep.subr.bf16.mxu1 %v1230_v0  ;;  %v1009_v24 = vld [vmem:[#allocation9 + $0x28] sm:$0xff]   ;;  %v1010_v25 = vld [vmem:[#allocation9 + $0x30] sm:$0xff]   ;;  %v1011_v26 = vld [vmem:[#allocation9 + $0x38] sm:$0xff]   ;;  %p1131_p13 = pneg %p1130_p10  ;;  %p1136_p3 = scmp.lt.s32.totalorder %s1134_s13, %s1128_s28 }
  0xa1   : > { %p1137_p12 = por %p1136_p3, %p1135_p7 }
  0xa2   : > { %837 = vmatpush3.bf16.msra.mxu0 %v990_v3  ;;  %857 = vmatpush3.bf16.msra.mxu1 %v998_v8 }
  0xa3   : > { %838 = vmatprep.subr.bf16.mxu0 %v1230_v0  ;;  %858 = vmatprep.subr.bf16.mxu1 %v1230_v0  ;;  %p1138_p0 = pnand %p1137_p12, %p1131_p13 }
  0xa6   : > { %839 = vmatpush3.bf16.msra.mxu0 %v991_v5  ;;  %859 = vmatpush3.bf16.msra.mxu1 %v999_v10 }
  0xa7   : > { %840 = vmatprep.subr.bf16.mxu0 %v1230_v0  ;;  %860 = vmatprep.subr.bf16.mxu1 %v1230_v0 }
  0xaa   : > { %841 = vmatpush3.bf16.msra.mxu0 %v992_v7  ;;  %861 = vmatpush3.bf16.msra.mxu1 %v1000_v12 }
  0xab   : > { %842 = vmatprep.subr.bf16.mxu0 %v1230_v0  ;;  %862 = vmatprep.subr.bf16.mxu1 %v1230_v0 }
  0xae   : > { %843 = vmatpush3.bf16.msra.mxu0 %v993_v9  ;;  %863 = vmatpush3.bf16.msra.mxu1 %v1001_v14 }
  0xaf   : > { %844 = vmatprep.subr.bf16.mxu0 %v1230_v0  ;;  %864 = vmatprep.subr.bf16.mxu1 %v1230_v0 }
  0xb2   : > { %845 = vmatpush3.bf16.msra.mxu0 %v994_v11  ;;  %865 = vmatpush3.bf16.msra.mxu1 %v1002_v16 }
  0xb3   : > { %846 = vmatprep.subr.bf16.mxu0 %v1230_v0  ;;  %866 = vmatprep.subr.bf16.mxu1 %v1230_v0 }
  0xb6   : > { %847 = vmatpush3.bf16.msra.mxu0 %v995_v13  ;;  %867 = vmatpush3.bf16.msra.mxu1 %v1003_v17 }
  0xb7   : > { %872 = vmatprep.subr.bf16.mxu1 %v1230_v0 }
  0xb9   : > { %849 = vmatmul.mubr.bf16.vlgmr.msra.gmra.mrb[0].mxu0 %v319_v15  ;;  %869 = vmatmul.mubr.bf16.vlgmr.msra.gmra.mrb[0].mxu1 %v431_v18 }
  0xba   : > { %873 = vmatpush3.bf16.msra.mxu1 %v1004_v19  ;;  %888 = vmatprep.mubr.msk.bf16.mxu1 %vm1231_vm0, %v1230_v0 }
  0xbb   : > { %874 = vmatprep.subr.bf16.mxu1 %v1230_v0 }
  0xbe   : > { %875 = vmatpush3.bf16.msra.mxu1 %v1005_v20 }
  0xbf   : > { %876 = vmatprep.subr.bf16.mxu1 %v1230_v0 }
  0xc2   : > { %877 = vmatpush3.bf16.msra.mxu1 %v1006_v21 }
  0xc3   : > { %878 = vmatprep.subr.bf16.mxu1 %v1230_v0 }
  0xc6   : > { %879 = vmatpush3.bf16.msra.mxu1 %v1007_v22 }
  0xc7   : > { %880 = vmatprep.subr.bf16.mxu1 %v1230_v0 }
  0xca   : > { %881 = vmatpush3.bf16.msra.mxu1 %v1008_v23 }
  0xcb   : > { %882 = vmatprep.subr.bf16.mxu1 %v1230_v0 }
  0xce   : > { %883 = vmatpush3.bf16.msra.mxu1 %v1009_v24 }
  0xcf   : > { %884 = vmatprep.subr.bf16.mxu1 %v1230_v0 }
  0xd2   : > { %885 = vmatpush3.bf16.msra.mxu1 %v1010_v25 }
  0xd3   : > { %886 = vmatprep.subr.bf16.mxu1 %v1230_v0 }
  0xd6   : > { %887 = vmatpush3.bf16.msra.mxu1 %v1011_v26 }
 0x18c   : > { %v402_v27 = vpop.f32.mrb[0].mxu0 }
 0x18d   : > { %v414_v28 = vpack.c.bf16 %v402_v27, %v402_v27  ;;  %v850_v29 = vpop.f32.mrb[1].mxu0 }
 0x18e   : > { %v405_v30 = vpop.f32.mrb[2].mxu0 }
 0x18f   : > { %v851_v31 = vpop.f32.mrb[3].mxu0  ;;  %889 = vmatmul.mubr.bf16.vlgmr.msra.gmra.mrb[0].mxu1 %v414_v28 }
 0x262   : > { %v618_v32 = vpop.f32.mrb[0].mxu1 }
 0x263   : > { %v624_v33 = vmax.f32 %v618_v32, 0.0  ;;  %v890_v34 = vpop.f32.mrb[1].mxu1 }
 0x264   : > { %v621_v35 = vpop.f32.mrb[2].mxu1 }
 0x265   : > { %v625_v36 = vpack.c.bf16 %v624_v33, %v624_v33  ;;  %v891_v37 = vpop.f32.mrb[3].mxu1 }
 0x267   : > { %626 = vst [vmem:[%s290_s23] sm:$0xf] %v625_v36 }
 0x268   : > { %1141 = shalt.err (!%p1138_p0)
}
 0x269   : > { %s1142_s7 = scalar_lea.hbm %s1536_s29, 64  ;;  %s1146_s19 = scalar_lea.hbm %s1590_s4, 128 }
 0x26a   : > { %p1143_p8 = scmp.ne.s32.totalorder %s1536_s29, %s1142_s7  ;;  %p1147_p9 = scmp.lt.u32.totalorder %s1536_s29, %s1590_s4 }
 0x26b   : > { %p1148_p2 = scmp.lt.u32.totalorder %s1146_s19, %s1142_s7  ;;  %p1150_p11 = scmp.lt.u32.totalorder %s1142_s7, %s1536_s29 }
 0x26c   : > { %p1144_p5 = pnand %p1143_p8, %p1629_p6 }
 0x26d   : > { %p1149_p4 = por %p1148_p2, %p1147_p9 }
 0x26e   : > { %p1145_p1 = pneg %p1144_p5 }
 0x26f   : > { %p1151_p10 = por %p1150_p11, %p1149_p4 }
 0x271   : > { %p1152_p13 = pnand %p1151_p10, %p1145_p1 }
 0x273   : > { %1155 = shalt.err (!%p1152_p13)
}
 0x274   : > { %908 = dma.vmem_to_hbm [thread:$0]  (%p1629_p6), %s1538_s6, 64, %s1536_s29, %s628_s18  }
 0x275 PF: > { %s653_s12 = sand.u32 1, %s1202_s15   ;;  %p1630_p7 = scmp.ne.s32.totalorder %s1606_s24, 0 }
 0x276   : > { %p1631_p3 = scmp.ge.s32.totalorder %s1222_s20, 2  ;;  %s654_s30 = scalar_lea.sflag [#allocation5], %s653_s12 }
 0x278   : > { %p925_p12 = pnand %p1631_p3, %p1630_p7 }
 0x27a   : > { %1197 = dma.done.wait (!%p925_p12), %s654_s30, 64  }
 0x27b   : > { %1199 = vsyncadd (!%p925_p12), %s654_s30, 4294967232  ;;  %s21_s20 = sadd.s32 1, %s1222_s20   ;;  %s1632_s5 = sld [smem:[#allocation18_spill]] }
 0x27c   : > { %p18_p0 = scmp.ge.s32.totalorder %s21_s20, 4   ;;  %s1633_s18 = sld [smem:[#allocation16_spill]] }
 0x27d   : > { %s1634_s19 = sld [smem:[#allocation17_spill]]  ;;  %s1635_s15 = smov %s1206_s16 }
 0x27e   : > { %s1636_s16 = smov %s1210_s17  ;;  %20 = sbr.rel (!%p18_p0) target bundleno = 9 (0x9), region = 109 }
 0x281   : > { %s1637_s17 = smov %s1632_s5 }
 0x285   :  { %659 = vsyncpa [#allocation4], 1 }
 0x286   :  { %661 = vsyncpa [#allocation4 + $0x1], 1 }
 0x287   :  { %662 = vsyncpa [#allocation7], 1 }
 0x288   :  { %663 = vsyncpa [#allocation5], 1 }
 0x289   :  { %665 = vsyncpa [#allocation5 + $0x1], 1 }

</bundles_post_ra>
